<compile_context>
chip_gen: v6e
topology: v6e:2x2x1
jax: 0.10.0
libtpu: 0.0.40
codegen_flags: <defaults>
</compile_context>

<pallas_src>
from functools import partial

import jax
import jax.numpy as jnp
from jax.experimental import pallas as pl
from jax.experimental.pallas import tpu as pltpu


def downsample_kernel(x_ref, w_ref, gamma_ref, beta_ref, o_ref, *,
                      gn_eps, group_size, groups_per_tile, true_pixels):
    """One (batch, Cout-tile) grid step: 1x1 conv matmul + GroupNorm on the tile."""
    # x_ref:     (1, Cin, Pp)   pixels for this batch element (bf16 or f32)
    # w_ref:     (Ct,  Cin)     standardised conv-weight tile, bf16
    # gamma_ref: (Ct, 1)        GroupNorm scale     beta_ref: (Ct, 1) shift
    # o_ref:     (1, Ct, Pp)    output tile, NCHW (channels-first) layout
    x = x_ref[0].astype(jnp.bfloat16)                 # no-op if already bf16
    w = w_ref[...]

    # --- 1x1 strided conv == single MXU matmul, f32 accumulation.
    y = jnp.dot(w, x, preferred_element_type=jnp.float32)           # (Ct, Pp) f32

    ct = y.shape[0]
    gt = groups_per_tile

    # --- per-channel sums over the pixel (lane) axis.  Padded pixel columns
    #     are zero and contribute nothing; the true count enters inv_count.
    s = jnp.sum(y, axis=1, keepdims=True)                           # (Ct, 1)
    ss = jnp.sum(y * y, axis=1, keepdims=True)                      # (Ct, 1)

    # --- tiny group-membership matrices built in-kernel (no HBM DMA, no
    #     concatenations / relayouts).  Channel c belongs to group c//gs, and
    #     group boundaries never straddle a Cout tile.
    ch = jax.lax.broadcasted_iota(jnp.int32, (gt, ct), 1)
    g0 = jax.lax.broadcasted_iota(jnp.int32, (gt, ct), 0) * group_size
    gsum = ((ch >= g0) & (ch < g0 + group_size)).astype(jnp.float32)    # (Gt, Ct)
    chb = jax.lax.broadcasted_iota(jnp.int32, (ct, gt), 0)
    g0b = jax.lax.broadcasted_iota(jnp.int32, (ct, gt), 1) * group_size
    gbcast = ((chb >= g0b) & (chb < g0b + group_size)).astype(jnp.float32)  # (Ct, Gt)

    s_g = jnp.dot(gsum, s, preferred_element_type=jnp.float32)      # (Gt, 1)
    ss_g = jnp.dot(gsum, ss, preferred_element_type=jnp.float32)    # (Gt, 1)

    inv_count = 1.0 / float(group_size * true_pixels)
    gmean = s_g * inv_count                                         # (Gt, 1)
    # single-pass variance can go slightly negative from cancellation -> clamp.
    gvar = jnp.maximum(ss_g * inv_count - gmean * gmean, 0.0)
    ginv = jax.lax.rsqrt(gvar + gn_eps)                             # (Gt, 1)

    mean_c = jnp.dot(gbcast, gmean, preferred_element_type=jnp.float32)  # (Ct, 1)
    inv_c = jnp.dot(gbcast, ginv, preferred_element_type=jnp.float32)    # (Ct, 1)

    # act=False in DownSample -> identity after the affine transform.
    o_ref[0] = ((y - mean_c) * (inv_c * gamma_ref[...]) + beta_ref[...]).astype(o_ref.dtype)


def _vmem_capacity_bytes(default=64 * 2**20):
    try:
        info = pltpu.get_tpu_info()
        cap = getattr(info, "vmem_capacity_bytes", None)
        return int(cap) if cap else int(default)
    except Exception:
        return int(default)


def downsample(x_nchw, weight_oihw, gamma, beta, *, stride, num_groups=32,
               conv_eps=1e-6, gn_eps=1e-5, out_dtype=jnp.bfloat16, cout_tiles=None):
    """DownSample.forward: GroupNorm(StdConv2d_1x1_stride(x)), NCHW in / NCHW out.

    out_dtype=jnp.bfloat16 halves the dominant HBM write stream (the op is
    memory-bound); pass jnp.float32 if downstream needs full precision.
    """
    N, Cin, H, W = x_nchw.shape
    Cout = weight_oihw.shape[0]
    assert Cout % num_groups == 0
    gs = Cout // num_groups

    # kernel_size=1 with SAME padding never pads; the strided conv is exactly a
    # stride-slice followed by a channel matmul.  (StdConv2d here has bias=False.)
    xs = x_nchw[:, :, ::stride, ::stride] if stride > 1 else x_nchw
    Ho, Wo = xs.shape[2], xs.shape[3]
    P = Ho * Wo
    Pp = pl.cdiv(P, 128) * 128            # lane-dense pixel axis (multiple of 128)

    # --- kernel input (N, Cin, Pp).  The subsample / zero-pad / bf16 cast fuse
    #     into a single host copy pass; when stride==1 and P is already lane
    #     aligned there is no host pass at all (cast happens in-kernel).
    # TODO(synk): for stride>1 the subsample could move into the kernel via a
    # strided-source DMA to drop this pass entirely when x has no producer.
    need_host_pass = (stride > 1) or (Pp != P)
    if need_host_pass:
        x_flat = xs.reshape(N, Cin, P)
        if Pp != P:
            x_flat = jnp.pad(x_flat, ((0, 0), (0, 0), (0, Pp - P)))
        x_kernel = x_flat.astype(jnp.bfloat16)
        x_item = 2
    else:
        x_kernel = xs.reshape(N, Cin, P)      # f32; cast in-kernel, no extra pass
        x_item = 4

    # --- hoisted weight standardisation (once, not per grid step).
    #     F.batch_norm(training=True): biased variance; eps=1e-6 matches StdConv2d.
    w = weight_oihw.reshape(Cout, Cin).astype(jnp.float32)
    w_mean = jnp.mean(w, axis=1, keepdims=True)
    w_c = w - w_mean
    w_var = jnp.mean(w_c * w_c, axis=1, keepdims=True)
    w_hat = (w_c * jax.lax.rsqrt(w_var + conv_eps)).astype(jnp.bfloat16)   # (Cout, Cin)

    gamma2 = gamma.reshape(Cout, 1).astype(jnp.float32)
    beta2 = beta.reshape(Cout, 1).astype(jnp.float32)

    # --- Cout tiling: second "parallel" grid axis so both v7x TensorCores stay
    #     busy when the batch axis alone cannot (N == 1).  Tile boundaries are
    #     group-aligned so GroupNorm groups never straddle tiles.
    if cout_tiles is None:
        cout_tiles = 2 if (N == 1 and num_groups % 2 == 0 and (Cout // 2) % 8 == 0) else 1
    assert num_groups % cout_tiles == 0 and Cout % cout_tiles == 0
    cout_t = Cout // cout_tiles
    assert cout_tiles == 1 or cout_t % 8 == 0
    groups_per_tile = num_groups // cout_tiles

    out_item = jnp.dtype(out_dtype).itemsize

    # --- explicit, generation-aware VMEM budget (v7x only has 64 MiB physical).
    blk_x = Cin * Pp * x_item
    blk_o = cout_t * Pp * out_item
    blk_const = cout_t * Cin * 2 + 2 * cout_t * 4
    y_tmp = cout_t * Pp * 4
    needed = 2 * (blk_x + blk_o + blk_const) + y_tmp + (2 << 20)
    vmem_cap = _vmem_capacity_bytes()
    # TODO(synk): if `needed` ever approaches ~0.75*vmem_cap (huge Cin*Pp),
    # switch to a two-pass P-chunked stats variant instead of clamping.
    vmem_limit = int(min(max(needed, 4 << 20), int(0.9 * vmem_cap)))

    cost = pl.CostEstimate(
        flops=2 * N * Cout * Cin * Pp,
        transcendentals=N * num_groups,
        bytes_accessed=(N * Cin * Pp * x_item + Cout * Cin * 2 + 2 * Cout * 4
                        + N * Cout * Pp * out_item),
    )

    kern = partial(downsample_kernel, gn_eps=gn_eps, group_size=gs,
                   groups_per_tile=groups_per_tile, true_pixels=P)

    out = pl.pallas_call(
        kern,
        out_shape=jax.ShapeDtypeStruct((N, Cout, Pp), out_dtype),
        grid=(N, cout_tiles),
        in_specs=[
            pl.BlockSpec((1, Cin, Pp), lambda n, t: (n, 0, 0)),
            # NOTE: the weight / affine inputs have constant block indices and
            # would ideally be single-buffered (pipeline_mode=pl.Buffered(1));
            # left at the default for maximally portable lowering.
            pl.BlockSpec((cout_t, Cin), lambda n, t: (t, 0)),
            pl.BlockSpec((cout_t, 1), lambda n, t: (t, 0)),
            pl.BlockSpec((cout_t, 1), lambda n, t: (t, 0)),
        ],
        out_specs=pl.BlockSpec((1, cout_t, Pp), lambda n, t: (n, t, 0)),
        compiler_params=pltpu.CompilerParams(
            dimension_semantics=("parallel", "parallel"),
            vmem_limit_bytes=vmem_limit,
        ),
        cost_estimate=cost,
    )(x_kernel, w_hat, gamma2, beta2)

    # Drop the padded (garbage) pixel columns and restore NCHW spatial dims.
    if Pp != P:
        out = out[:, :, :P]
    return out.reshape(N, Cout, Ho, Wo)


if __name__ == "__main__":
    # Small shapes consistent with the module (out_channels divisible by the
    # default num_groups=32).
    N, Cin, Cout, H, W, stride = 2, 16, 32, 16, 16, 2

    key = jax.random.PRNGKey(0)
    kx, kw, kg, kb = jax.random.split(key, 4)
    x = jax.random.normal(kx, (N, Cin, H, W), dtype=jnp.float32)
    weight = jax.random.normal(kw, (Cout, Cin, 1, 1), dtype=jnp.float32) * 0.1
    gamma = 1.0 + 0.1 * jax.random.normal(kg, (Cout,), dtype=jnp.float32)
    beta = 0.1 * jax.random.normal(kb, (Cout,), dtype=jnp.float32)

    fn = jax.jit(partial(downsample, stride=stride, num_groups=32))
    y = jax.block_until_ready(fn(x, weight, gamma, beta))

    assert y.shape == (N, Cout, H // stride, W // stride)
    assert bool(jnp.all(jnp.isfinite(y.astype(jnp.float32))))
    print("KERNEL_OK")
</pallas_src>

<mosaic_0001>
module attributes {stable_mosaic.version = 11 : i64} {
  func.func @downsample_kernel(%arg0: i32, %arg1: i32, %arg2: memref<1x16x128xbf16, #tpu.memory_space<vmem>>, %arg3: memref<32x16xbf16, #tpu.memory_space<vmem>>, %arg4: memref<32x1xf32, #tpu.memory_space<vmem>>, %arg5: memref<32x1xf32, #tpu.memory_space<vmem>>, %arg6: memref<1x32x128xbf16, #tpu.memory_space<vmem>>) attributes {dimension_semantics = [#tpu.dimension_semantics<parallel>, #tpu.dimension_semantics<parallel>], iteration_bounds = array<i64: 2, 1>, scalar_prefetch = 0 : i64, scratch_operands = 0 : i64, tpu.core_type = #tpu.core_type<tc>, window_params = [{transform_indices = @transform_0, window_bounds = array<i64: 1, 16, 128>}, {transform_indices = @transform_1, window_bounds = array<i64: 32, 16>}, {transform_indices = @transform_2, window_bounds = array<i64: 32, 1>}, {transform_indices = @transform_3, window_bounds = array<i64: 32, 1>}, {transform_indices = @transform_4, window_bounds = array<i64: 1, 32, 128>}]} {
    %c0 = arith.constant 0 : index
    %c0_0 = arith.constant 0 : index
    %c0_1 = arith.constant 0 : index
    %0 = vector.load %arg2[%c0, %c0_0, %c0_1] : memref<1x16x128xbf16, #tpu.memory_space<vmem>>, vector<1x16x128xbf16>
    %1 = vector.shape_cast %0 : vector<1x16x128xbf16> to vector<16x128xbf16>
    %c0_2 = arith.constant 0 : index
    %c0_3 = arith.constant 0 : index
    %2 = vector.load %arg3[%c0_2, %c0_3] : memref<32x16xbf16, #tpu.memory_space<vmem>>, vector<32x16xbf16>
    %cst = arith.constant dense<0.000000e+00> : vector<32x128xf32>
    %3 = tpu.matmul %2, %1, %cst {dimension_numbers = #tpu.dot_dimension_numbers<[1], [0], [0], [1], [0, 0, 1, 1], [], []>} : vector<32x16xbf16>, vector<16x128xbf16>, vector<32x128xf32> -> vector<32x128xf32>
    %cst_4 = arith.constant dense<0.000000e+00> : vector<32xf32>
    %4 = vector.multi_reduction <add>, %3, %cst_4 [1] : vector<32x128xf32> to vector<32xf32>
    %5 = vector.shape_cast %4 : vector<32xf32> to vector<32x1xf32>
    %6 = arith.mulf %3, %3 : vector<32x128xf32>
    %cst_5 = arith.constant dense<0.000000e+00> : vector<32xf32>
    %7 = vector.multi_reduction <add>, %6, %cst_5 [1] : vector<32x128xf32> to vector<32xf32>
    %8 = vector.shape_cast %7 : vector<32xf32> to vector<32x1xf32>
    %9 = tpu.iota {dimensions = array<i32: 1>} : vector<32x32xi32>
    %10 = tpu.iota {dimensions = array<i32: 0>} : vector<32x32xi32>
    %c1_i32 = arith.constant 1 : i32
    %11 = vector.broadcast %c1_i32 : i32 to vector<32x32xi32>
    %12 = arith.muli %10, %11 : vector<32x32xi32>
    %13 = arith.cmpi sge, %9, %12 : vector<32x32xi32>
    %c1_i32_6 = arith.constant 1 : i32
    %14 = vector.broadcast %c1_i32_6 : i32 to vector<32x32xi32>
    %15 = arith.addi %12, %14 : vector<32x32xi32>
    %16 = arith.cmpi slt, %9, %15 : vector<32x32xi32>
    %17 = arith.andi %13, %16 : vector<32x32xi1>
    %18 = arith.extui %17 : vector<32x32xi1> to vector<32x32xi32>
    %19 = arith.sitofp %18 : vector<32x32xi32> to vector<32x32xf32>
    %20 = tpu.iota {dimensions = array<i32: 0>} : vector<32x32xi32>
    %21 = tpu.iota {dimensions = array<i32: 1>} : vector<32x32xi32>
    %c1_i32_7 = arith.constant 1 : i32
    %22 = vector.broadcast %c1_i32_7 : i32 to vector<32x32xi32>
    %23 = arith.muli %21, %22 : vector<32x32xi32>
    %24 = arith.cmpi sge, %20, %23 : vector<32x32xi32>
    %c1_i32_8 = arith.constant 1 : i32
    %25 = vector.broadcast %c1_i32_8 : i32 to vector<32x32xi32>
    %26 = arith.addi %23, %25 : vector<32x32xi32>
    %27 = arith.cmpi slt, %20, %26 : vector<32x32xi32>
    %28 = arith.andi %24, %27 : vector<32x32xi1>
    %29 = arith.extui %28 : vector<32x32xi1> to vector<32x32xi32>
    %30 = arith.sitofp %29 : vector<32x32xi32> to vector<32x32xf32>
    %cst_9 = arith.constant dense<0.000000e+00> : vector<32x1xf32>
    %31 = tpu.matmul %19, %5, %cst_9 {dimension_numbers = #tpu.dot_dimension_numbers<[1], [0], [0], [1], [0, 0, 1, 1], [], []>} : vector<32x32xf32>, vector<32x1xf32>, vector<32x1xf32> -> vector<32x1xf32>
    %cst_10 = arith.constant dense<0.000000e+00> : vector<32x1xf32>
    %32 = tpu.matmul %19, %8, %cst_10 {dimension_numbers = #tpu.dot_dimension_numbers<[1], [0], [0], [1], [0, 0, 1, 1], [], []>} : vector<32x32xf32>, vector<32x1xf32>, vector<32x1xf32> -> vector<32x1xf32>
    %cst_11 = arith.constant 1.562500e-02 : f32
    %33 = vector.broadcast %cst_11 : f32 to vector<32x1xf32>
    %34 = arith.mulf %31, %33 : vector<32x1xf32>
    %cst_12 = arith.constant 1.562500e-02 : f32
    %35 = vector.broadcast %cst_12 : f32 to vector<32x1xf32>
    %36 = arith.mulf %32, %35 : vector<32x1xf32>
    %37 = arith.mulf %34, %34 : vector<32x1xf32>
    %38 = arith.subf %36, %37 : vector<32x1xf32>
    %cst_13 = arith.constant 0.000000e+00 : f32
    %39 = vector.broadcast %cst_13 : f32 to vector<32x1xf32>
    %40 = arith.maximumf %38, %39 : vector<32x1xf32>
    %cst_14 = arith.constant 9.99999974E-6 : f32
    %41 = vector.broadcast %cst_14 : f32 to vector<32x1xf32>
    %42 = arith.addf %40, %41 : vector<32x1xf32>
    %43 = math.rsqrt %42 : vector<32x1xf32>
    %cst_15 = arith.constant dense<0.000000e+00> : vector<32x1xf32>
    %44 = tpu.matmul %30, %34, %cst_15 {dimension_numbers = #tpu.dot_dimension_numbers<[1], [0], [0], [1], [0, 0, 1, 1], [], []>} : vector<32x32xf32>, vector<32x1xf32>, vector<32x1xf32> -> vector<32x1xf32>
    %cst_16 = arith.constant dense<0.000000e+00> : vector<32x1xf32>
    %45 = tpu.matmul %30, %43, %cst_16 {dimension_numbers = #tpu.dot_dimension_numbers<[1], [0], [0], [1], [0, 0, 1, 1], [], []>} : vector<32x32xf32>, vector<32x1xf32>, vector<32x1xf32> -> vector<32x1xf32>
    %46 = vector.broadcast %44 : vector<32x1xf32> to vector<32x128xf32>
    %47 = arith.subf %3, %46 : vector<32x128xf32>
    %c0_17 = arith.constant 0 : index
    %c0_18 = arith.constant 0 : index
    %48 = vector.load %arg4[%c0_17, %c0_18] : memref<32x1xf32, #tpu.memory_space<vmem>>, vector<32x1xf32>
    %49 = arith.mulf %45, %48 : vector<32x1xf32>
    %50 = vector.broadcast %49 : vector<32x1xf32> to vector<32x128xf32>
    %51 = arith.mulf %47, %50 : vector<32x128xf32>
    %c0_19 = arith.constant 0 : index
    %c0_20 = arith.constant 0 : index
    %52 = vector.load %arg5[%c0_19, %c0_20] : memref<32x1xf32, #tpu.memory_space<vmem>>, vector<32x1xf32>
    %53 = vector.broadcast %52 : vector<32x1xf32> to vector<32x128xf32>
    %54 = arith.addf %51, %53 : vector<32x128xf32>
    %55 = arith.truncf %54 : vector<32x128xf32> to vector<32x128xbf16>
    %c0_21 = arith.constant 0 : index
    %c0_22 = arith.constant 0 : index
    %c0_23 = arith.constant 0 : index
    %56 = vector.load %arg6[%c0_21, %c0_22, %c0_23] : memref<1x32x128xbf16, #tpu.memory_space<vmem>>, vector<1x32x128xbf16>
    %57 = vector.shape_cast %56 : vector<1x32x128xbf16> to vector<32x128xbf16>
    %58 = vector.shape_cast %55 : vector<32x128xbf16> to vector<1x32x128xbf16>
    tpu.vector_store %arg6[%c0_21, %c0_22, %c0_23], %58 {strides = array<i32>} : memref<1x32x128xbf16, #tpu.memory_space<vmem>>, vector<1x32x128xbf16>,
    return
  }
  func.func @transform_0(%arg0: i32, %arg1: i32) -> (i32, i32, i32) {
    %c0_i32 = arith.constant 0 : i32
    %c0_i32_0 = arith.constant 0 : i32
    %c0_i32_1 = arith.constant 0 : i32
    return %arg0, %c0_i32, %c0_i32_0 : i32, i32, i32
  }
  func.func @transform_1(%arg0: i32, %arg1: i32) -> (i32, i32) {
    %c0_i32 = arith.constant 0 : i32
    %c0_i32_0 = arith.constant 0 : i32
    return %arg1, %c0_i32 : i32, i32
  }
  func.func @transform_2(%arg0: i32, %arg1: i32) -> (i32, i32) {
    %c0_i32 = arith.constant 0 : i32
    %c0_i32_0 = arith.constant 0 : i32
    return %arg1, %c0_i32 : i32, i32
  }
  func.func @transform_3(%arg0: i32, %arg1: i32) -> (i32, i32) {
    %c0_i32 = arith.constant 0 : i32
    %c0_i32_0 = arith.constant 0 : i32
    return %arg1, %c0_i32 : i32, i32
  }
  func.func @transform_4(%arg0: i32, %arg1: i32) -> (i32, i32, i32) {
    %c0_i32 = arith.constant 0 : i32
    %c0_i32_0 = arith.constant 0 : i32
    return %arg0, %arg1, %c0_i32 : i32, i32, i32
  }
}

</mosaic_0001>

<bundles_post_ra>
// kernel: downsample.1
= control target key start
LH: loop header
LB: loop body
LE: loop exit
PB: predicated region body
PF: predicated region fallthrough
CT: control target
= control target key end

     0   :  { %s1312_s15 = smov 0   ;;  %s1314_s16 = smov 0   ;;  %s1460_s0 = inlined_call_operand.vmem [shape: bf16[2,16,128], index: 0, kind: input, shape index: {}]   ;;  %s1461_s1 = inlined_call_operand.vmem [shape: bf16[32,16], index: 1, kind: input, shape index: {}]   ;;  %s1462_s2 = inlined_call_operand.vmem [shape: f32[32,1], index: 2, kind: input, shape index: {}]   ;;  %s1463_s3 = inlined_call_operand.vmem [shape: f32[32,1], index: 3, kind: input, shape index: {}]   ;;  %s1464_s4 = inlined_call_operand.vmem [shape: bf16[2,32,128], index: 4, kind: output, shape index: {}]  }
   0x1   :  { %s1316_s17 = smov 0  }
   0x2 LB: > { %s26_s18 = sadd.s32 1, %s1279_s16  ;;  %p1068_p0 = scmp.ge.s32.totalorder %s1283_s17, 1  ;;  %s1283_s17 = sphi %s1316_s17, %s14_s17   ;;  %s1279_s16 = sphi %s1314_s16, %s1466_s16   ;;  %s1275_s15 = sphi %s1312_s15, %s1465_s15  }
   0x3   : > { %p28_p1 = scmp.ge.s32.totalorder %s26_s18, 2  ;;  %p209_p2 = scmp.lt.s32.totalorder %s1283_s17, 3 }
   0x5   : > { %s1468_s18 = smov (%p28_p1, %s26_s18), 0  ;;  %p210_p3 = pnand %p1068_p0, %p209_p2 }
   0x6   : > { %p254_p4 = scmp.lt.s32.totalorder (!%p210_p3), %s1275_s15, 1 }
   0x7   : > { %213 = sbr.rel (%p210_p3) target bundleno = 934 (0x3a6), region = 36 }
   0xc   : > { %v1251_v0 = vld [vmem:[%s1461_s1] sm:$0xff]   ;;  %vm310_vm0 = vcmask 130048   ;;  %s1470_s15 = smov (!%p254_p4, %s1275_s15), 1  ;;  %v1252_v2 = vld [vmem:[%s1461_s1 + $0x8] sm:$0xff]   ;;  %v386_v11 = vlaneseq  ;;  %v1285_v15 = vmov 0.0   ;;  %vm438_vm4 = vcmask 261120  }
   0xd   : > { %1162 = vmatprep.mubr.msk.bf16.mxu0 %vm310_vm0, %v1251_v0  ;;  %s1108_s21 = sshll.u32 %s1470_s15, 3  ;;  %v887_v36 = vld [vmem:[%s1463_s3] sm:$0xff]  ;;  %v888_v37 = vld [vmem:[%s1463_s3 + $0x8] sm:$0xff]  ;;  %v1286_v38 = vmov 0  }
   0xe   : > { %s258_s24 = scalar_lea.vmem %s1460_s0, %s1108_s21  ;;  %v389_v12 = vshrl.u32 %v386_v11, 7  ;;  %v1362_v13 = vand.u32 127, %v386_v11  ;;  %1248 = vset.pattern.permute.xlu1 %v1286_v38  ;;  %1249 = vset.pattern.permute.xlu0 %v1286_v38  ;;  %s1109_s21 = sshll.u32 %s1470_s15, 4 }
   0xf   : > { %v1250_v1 = vld [vmem:[%s258_s24] sm:$0xff]   ;;  %s285_s24 = scalar_lea.vmem %s1464_s4, %s1109_s21 }
  0x10   : > { %1160 = vmatprep.subr.bf16.mxu0 %v1250_v1  ;;  %v397_v14 = vadd.s32 1, %v389_v12  ;;  %vm393_vm1 = vcmp.ge.s32.totalorder %v1362_v13, %v389_v12  ;;  %v1369_v17 = vadd.s32 8, %v389_v12  ;;  %v1371_v18 = vadd.s32 16, %v389_v12 }
  0x11   : > { %1161 = vmatpush3.bf16.msra.mxu0 %v1250_v1  ;;  %v1374_v22 = vadd.s32 24, %v389_v12  ;;  %v421_v34 = vadd.s32 1, %v1362_v13  ;;  %vm417_vm14 = vcmp.ge.s32.totalorder %v389_v12, %v1362_v13 }
  0x12   : > { %vm401_vm2 = vcmp.lt.s32.totalorder %v1362_v13, %v397_v14  ;;  %v398_v21 = vadd.s32 1, %v1369_v17  ;;  %v399_v23 = vadd.s32 1, %v1371_v18  ;;  %vm394_vm5 = vcmp.ge.s32.totalorder %v1362_v13, %v1369_v17 }
  0x13   : > { %vm405_vm3 = vmand %vm393_vm1, %vm401_vm2  ;;  %v400_v26 = vadd.s32 1, %v1374_v22  ;;  %vm395_vm7 = vcmp.ge.s32.totalorder %v1362_v13, %v1371_v18  ;;  %vm396_vm11 = vcmp.ge.s32.totalorder %v1362_v13, %v1374_v22  ;;  %vm422_vm15 = vcmp.lt.s32.totalorder %v389_v12, %v421_v34 }
  0x14   : > { %1163 = vmatmul.mubr.msk.bf16.vlgmr.msra.gmra.mxu0 %vm310_vm0, %v1252_v2  ;;  %v1078_v16 = vsel %vm405_vm3, 1.0, %v1285_v15  ;;  %vm402_vm6 = vcmp.lt.s32.totalorder %v1362_v13, %v398_v21  ;;  %vm403_vm8 = vcmp.lt.s32.totalorder %v1362_v13, %v399_v23  ;;  %vm426_vm0 = vmand %vm417_vm14, %vm422_vm15  ;;  %vm418_vm1 = vcmp.ge.s32.totalorder %v1369_v17, %v1362_v13  ;;  %v890_v21 = vld [vmem:[%s1463_s3 + $0x18] sm:$0xff]  ;;  %v856_v23 = vld [vmem:[%s1462_s2 + $0x8] sm:$0xff] }
  0x15   : > { %1174 = vmatprep.mubr.msk.f32.mxu1 %vm438_vm4, %v1078_v16  ;;  %1188 = vmatprep.mubr.msk.f32.mxu0 %vm438_vm4, %v1078_v16  ;;  %vm406_vm9 = vmand %vm394_vm5, %vm402_vm6  ;;  %vm404_vm12 = vcmp.lt.s32.totalorder %v1362_v13, %v400_v26  ;;  %v1082_v35 = vsel %vm426_vm0, 1.0, %v1285_v15  ;;  %vm423_vm2 = vcmp.lt.s32.totalorder %v1369_v17, %v421_v34  ;;  %vm419_vm3 = vcmp.ge.s32.totalorder %v1371_v18, %v1362_v13 }
  0x16   : > { %vm407_vm10 = vmand %vm395_vm7, %vm403_vm8  ;;  %v1079_v30 = vsel %vm406_vm9, 1.0, %v1285_v15  ;;  %vm424_vm5 = vcmp.lt.s32.totalorder %v1371_v18, %v421_v34  ;;  %vm420_vm8 = vcmp.ge.s32.totalorder %v1374_v22, %v1362_v13  ;;  %vm425_vm9 = vcmp.lt.s32.totalorder %v1374_v22, %v421_v34 }
  0x17   : > { %v1080_v31 = vsel %vm407_vm10, 1.0, %v1285_v15  ;;  %vm408_vm13 = vmand %vm396_vm11, %vm404_vm12 }
  0x18   : > { %v1081_v33 = vsel %vm408_vm13, 1.0, %v1285_v15  ;;  %vm427_vm6 = vmand %vm418_vm1, %vm423_vm2 }
  0x19   : > { %vm428_vm7 = vmand %vm419_vm3, %vm424_vm5  ;;  %v1083_v1 = vsel %vm427_vm6, 1.0, %v1285_v15 }
  0x1a   : > { %vm429_vm10 = vmand %vm420_vm8, %vm425_vm9 }
  0x1b   : > { %v1085_v12 = vsel %vm429_vm10, 1.0, %v1285_v15 }
  0xd4   : > { %v1342_v3 = vpop.f32.mrf.mxu0 }
  0xd5   : > { %370 = vadd.xlane.f32.xlu0 %v1342_v3  ;;  %v376_v7 = vmul.f32 %v1342_v3, %v1342_v3 }
  0xd6   : > { %v1345_v4 = vpop.f32.mrf.mxu0 }
  0xd7   : > { %366 = vadd.xlane.f32.xlu1 %v1345_v4  ;;  %v374_v10 = vmul.f32 %v1345_v4, %v1345_v4 }
  0xd8   : > { %v1348_v5 = vpop.f32.mrf.mxu0 }
  0xd9   : > { %372 = vadd.xlane.f32.xlu0 %v1348_v5  ;;  %v377_v6 = vmul.f32 %v1348_v5, %v1348_v5 }
  0xda   : > { %v1355_v8 = vpop.f32.mrf.mxu0 }
  0xdb   : > { %384 = vadd.xlane.f32.xlu1 %v377_v6  ;;  %v375_v9 = vmul.f32 %v1355_v8, %v1355_v8  ;;  %v1084_v6 = vsel %vm428_vm7, 1.0, %v1285_v15 }
  0xdd   : > { %382 = vadd.xlane.f32.xlu0 %v376_v7 }
  0xdf   : > { %368 = vadd.xlane.f32.xlu1 %v1355_v8 }
  0xe1   : > { %380 = vadd.xlane.f32.xlu0 %v375_v9 }
  0xe3   : > { %378 = vadd.xlane.f32.xlu1 %v374_v10 }
  0xf4   : > { %893 = vperm.xlu1 %1248, %v887_v36  }
  0xf7   : > { %898 = vperm.xlu0 %1249, %v888_v37  }
 0x15e   : > { %v371_v19 = vpop.xlane.xlu0 %370 }
 0x160   : > { %v367_v20 = vpop.xlane.xlu1 %366 }
 0x162   : > { %v373_v24 = vpop.xlane.xlu0 %372 }
 0x163   : > { %1166 = vmatprep.subr.mxu1 %v373_v24 }
 0x164   : > { %1167 = vmatpush3.msra.mxu1 %v373_v24  ;;  %v385_v25 = vpop.xlane.xlu1 %384 }
 0x165   : > { %1168 = vmatprep.subr.mxu1 %v371_v19  ;;  %1180 = vmatprep.subr.mxu0 %v385_v25 }
 0x166   : > { %1169 = vmatpush3.msra.mxu1 %v371_v19  ;;  %v383_v27 = vpop.xlane.xlu0 %382  ;;  %1181 = vmatpush3.msra.mxu0 %v385_v25 }
 0x167   : > { %1182 = vmatprep.subr.mxu0 %v383_v27 }
 0x168   : > { %1183 = vmatpush3.msra.mxu0 %v383_v27  ;;  %v369_v28 = vpop.xlane.xlu1 %368  ;;  %v855_v27 = vld [vmem:[%s1462_s2] sm:$0xff] }
 0x169   : > { %1170 = vmatprep.subr.mxu1 %v369_v28 }
 0x16a   : > { %1171 = vmatpush3.msra.mxu1 %v369_v28  ;;  %v381_v29 = vpop.xlane.xlu0 %380  ;;  %v858_v28 = vld [vmem:[%s1462_s2 + $0x18] sm:$0xff] }
 0x16b   : > { %1172 = vmatprep.subr.mxu1 %v367_v20  ;;  %1184 = vmatprep.subr.mxu0 %v381_v29 }
 0x16c   : > { %1173 = vmatpush3.msra.mxu1 %v367_v20  ;;  %v379_v32 = vpop.xlane.xlu1 %378  ;;  %1185 = vmatpush3.msra.mxu0 %v381_v29 }
 0x16d   : > { %1175 = vmatmul.mubr.msk.f32.vlgmr.msra.gmra.mxu1 %vm438_vm4, %v1079_v30  ;;  %1186 = vmatprep.subr.mxu0 %v379_v32 }
 0x16e   : > { %1187 = vmatpush3.msra.mxu0 %v379_v32  ;;  %1177 = vmatprep.mubr.msk.f32.mxu1 %vm438_vm4, %v1080_v31 }
 0x16f   : > { %1189 = vmatmul.mubr.msk.f32.vlgmr.msra.gmra.mxu0 %vm438_vm4, %v1079_v30 }
 0x170   : > { %1191 = vmatprep.mubr.msk.f32.mxu0 %vm438_vm4, %v1080_v31  ;;  %v894_v36 = vpop.permute.xlu1 %893 }
 0x171   : > { %1178 = vmatmul.mubr.msk.f32.gmra.mxu1 %vm438_vm4, %v1081_v33 }
 0x172   : > { %1202 = vmatprep.mubr.msk.f32.mxu1 %vm438_vm4, %v1082_v35 }
 0x173   : > { %1192 = vmatmul.mubr.msk.f32.gmra.mxu0 %vm438_vm4, %v1081_v33  ;;  %v857_v33 = vld [vmem:[%s1462_s2 + $0x10] sm:$0xff] }
 0x174   : > { %1216 = vmatprep.mubr.msk.f32.mxu0 %vm438_vm4, %v1082_v35  ;;  %v889_v35 = vld [vmem:[%s1463_s3 + $0x10] sm:$0xff] }
 0x22d   : > { %v1176_v39 = vpop.f32.mrf.mxu1 }
 0x22e   : > { %v622_v40 = vmul.f32 0.015625, %v1176_v39  ;;  %v899_v39 = vpop.permute.xlu0 %898 }
 0x22f   : > { %v517_v41 = vpop.f32.mrf.mxu1  ;;  %v1190_v42 = vpop.f32.mrf.mxu0 }
 0x230   : > { %v621_v43 = vmul.f32 0.015625, %v517_v41  ;;  %v626_v44 = vmul.f32 0.015625, %v1190_v42  ;;  %v630_v45 = vmul.f32 %v622_v40, %v622_v40 }
 0x231   : > { %v1179_v46 = vpop.f32.mrf.mxu1  ;;  %v602_v47 = vpop.f32.mrf.mxu0 }
 0x232   : > { %v624_v48 = vmul.f32 0.015625, %v1179_v46  ;;  %v625_v49 = vmul.f32 0.015625, %v602_v47  ;;  %v629_v50 = vmul.f32 %v621_v43, %v621_v43  ;;  %v634_v55 = vsub.f32 %v626_v44, %v630_v45 }
 0x233   : > { %v527_v51 = vpop.f32.mrf.mxu1  ;;  %v1193_v52 = vpop.f32.mrf.mxu0 }
 0x234   : > { %v623_v53 = vmul.f32 0.015625, %v527_v51  ;;  %v628_v54 = vmul.f32 0.015625, %v1193_v52  ;;  %1194 = vmatprep.subr.mxu1 %v624_v48  ;;  %v632_v56 = vmul.f32 %v624_v48, %v624_v48  ;;  %v633_v60 = vsub.f32 %v625_v49, %v629_v50 }
 0x235   : > { %v612_v57 = vpop.f32.mrf.mxu0  ;;  %1195 = vmatpush3.msra.mxu1 %v624_v48  ;;  %v638_v63 = vmax.f32 %v634_v55, 0.0 }
 0x236   : > { %v627_v58 = vmul.f32 0.015625, %v612_v57  ;;  %v631_v59 = vmul.f32 %v623_v53, %v623_v53  ;;  %1196 = vmatprep.subr.mxu1 %v623_v53  ;;  %v636_v61 = vsub.f32 %v628_v54, %v632_v56  ;;  %v637_v7 = vmax.f32 %v633_v60, 0.0 }
 0x237   : > { %1197 = vmatpush3.msra.mxu1 %v623_v53  ;;  %v642_v11 = vadd.f32 1e-05, %v638_v63 }
 0x238   : > { %v635_v62 = vsub.f32 %v627_v58, %v631_v59  ;;  %1198 = vmatprep.subr.mxu1 %v622_v40  ;;  %v640_v0 = vmax.f32 %v636_v61, 0.0  ;;  %v641_v13 = vadd.f32 1e-05, %v637_v7 }
 0x239   : > { %1199 = vmatpush3.msra.mxu1 %v622_v40 }
 0x23a   : > { %v639_v2 = vmax.f32 %v635_v62, 0.0  ;;  %1200 = vmatprep.subr.mxu1 %v621_v43  ;;  %v644_v9 = vadd.f32 1e-05, %v640_v0 }
 0x23b   : > { %1201 = vmatpush3.msra.mxu1 %v621_v43 }
 0x23c   : > { %v643_v10 = vadd.f32 1e-05, %v639_v2  ;;  %1203 = vmatmul.mubr.msk.f32.vlgmr.msra.gmra.mxu1 %vm438_vm4, %v1083_v1  ;;  %1253 = vrsqrt.f32 %v644_v9 }
 0x23d   : > { %1205 = vmatprep.mubr.msk.f32.mxu1 %vm438_vm4, %v1084_v6 }
 0x23e   : > { %1255 = vrsqrt.f32 %v643_v10 }
 0x23f   : > { %1257 = vrsqrt.f32 %v642_v11 }
 0x240   : > { %1206 = vmatmul.mubr.msk.f32.gmra.mxu1 %vm438_vm4, %v1085_v12  ;;  %1259 = vrsqrt.f32 %v641_v13 }
 0x249   : > { %v1254_v14 = vpop.eup %1253 }
 0x24a   : > { %1208 = vmatprep.subr.mxu0 %v1254_v14 }
 0x24b   : > { %v1256_v16 = vpop.eup %1255  ;;  %1209 = vmatpush3.msra.mxu0 %v1254_v14 }
 0x24c   : > { %1210 = vmatprep.subr.mxu0 %v1256_v16  ;;  %v1258_v17 = vpop.eup %1257 }
 0x24d   : > { %1211 = vmatpush3.msra.mxu0 %v1256_v16  ;;  %v1260_v18 = vpop.eup %1259 }
 0x24e   : > { %1212 = vmatprep.subr.mxu0 %v1258_v17 }
 0x24f   : > { %1213 = vmatpush3.msra.mxu0 %v1258_v17 }
 0x250   : > { %1214 = vmatprep.subr.mxu0 %v1260_v18 }
 0x251   : > { %1215 = vmatpush3.msra.mxu0 %v1260_v18 }
 0x252   : > { %1217 = vmatmul.mubr.msk.f32.vlgmr.msra.gmra.mxu0 %vm438_vm4, %v1083_v1 }
 0x253   : > { %1219 = vmatprep.mubr.msk.f32.mxu0 %vm438_vm4, %v1084_v6 }
 0x256   : > { %1220 = vmatmul.mubr.msk.f32.gmra.mxu0 %vm438_vm4, %v1085_v12 }
 0x2fc   : > { %v1204_v15 = vpop.f32.mrf.mxu1 }
 0x2fd   : > { %838 = vperm.xlu1 %1248, %v1204_v15  }
 0x2fe   : > { %v727_v19 = vpop.f32.mrf.mxu1 }
 0x2ff   : > { %833 = vperm.xlu0 %1249, %v727_v19  }
 0x300   : > { %v1207_v20 = vpop.f32.mrf.mxu1 }
 0x301   : > { %848 = vperm.xlu1 %1248, %v1207_v20  }
 0x302   : > { %v737_v22 = vpop.f32.mrf.mxu1 }
 0x303   : > { %908 = vperm.xlu0 %1249, %v890_v21  }
 0x305   : > { %843 = vperm.xlu1 %1248, %v737_v22  }
 0x312   : > { %v1218_v24 = vpop.f32.mrf.mxu0 }
 0x313   : > { %v860_v25 = vmul.f32 %v1218_v24, %v856_v23 }
 0x314   : > { %v812_v26 = vpop.f32.mrf.mxu0 }
 0x315   : > { %870 = vperm.xlu1 %1248, %v860_v25   ;;  %v859_v29 = vmul.f32 %v855_v27, %v812_v26 }
 0x316   : > { %v1221_v30 = vpop.f32.mrf.mxu0 }
 0x317   : > { %v862_v31 = vmul.f32 %v1221_v30, %v858_v28 }
 0x318   : > { %v822_v32 = vpop.f32.mrf.mxu0 }
 0x319   : > { %865 = vperm.xlu1 %1248, %v859_v29   ;;  %v861_v34 = vmul.f32 %v857_v33, %v822_v32 }
 0x31d   : > { %880 = vperm.xlu1 %1248, %v862_v31  }
 0x321   : > { %875 = vperm.xlu1 %1248, %v861_v34  }
 0x325   : > { %903 = vperm.xlu1 %1248, %v889_v35  }
 0x378   : > { %v839_v37 = vpop.permute.xlu1 %838 }
 0x379   : > { %v852_v43 = vsub.f32 %v1355_v8, %v839_v37 }
 0x37a   : > { %v834_v41 = vpop.permute.xlu0 %833 }
 0x37b   : > { %v851_v44 = vsub.f32 %v1345_v4, %v834_v41 }
 0x37c   : > { %v849_v38 = vpop.permute.xlu1 %848 }
 0x37d   : > { %v854_v52 = vsub.f32 %v1348_v5, %v849_v38 }
 0x37e   : > { %v909_v55 = vpop.permute.xlu0 %908 }
 0x380   : > { %v844_v40 = vpop.permute.xlu1 %843 }
 0x381   : > { %v853_v8 = vsub.f32 %v1342_v3, %v844_v40 }
 0x390   : > { %v871_v42 = vpop.permute.xlu1 %870 }
 0x391   : > { %v884_v45 = vmul.f32 %v871_v42, %v852_v43 }
 0x393   : > { %v912_v48 = vadd.f32 %v899_v39, %v884_v45 }
 0x394   : > { %v866_v46 = vpop.permute.xlu1 %865 }
 0x395   : > { %v883_v47 = vmul.f32 %v866_v46, %v851_v44 }
 0x397   : > { %v911_v49 = vadd.f32 %v894_v36, %v883_v47 }
 0x398   : > { %v881_v50 = vpop.permute.xlu1 %880 }
 0x399   : > { %v1117_v51 = vpack.c.bf16 %v912_v48, %v911_v49  ;;  %v886_v54 = vmul.f32 %v881_v50, %v854_v52 }
 0x39b   : > { %1118 = vst [vmem:[%s285_s24] sm:$0xff] %v1117_v51   ;;  %v914_v57 = vadd.f32 %v909_v55, %v886_v54 }
 0x39c   : > { %v876_v53 = vpop.permute.xlu1 %875 }
 0x39d   : > { %v885_v4 = vmul.f32 %v876_v53, %v853_v8 }
 0x3a0   : > { %v904_v56 = vpop.permute.xlu1 %903 }
 0x3a1   : > { %v913_v58 = vadd.f32 %v904_v56, %v885_v4 }
 0x3a3   : > { %v1122_v59 = vpack.c.bf16 %v914_v57, %v913_v58 }
 0x3a5   : > { %1124 = vst [vmem:[%s285_s24 + $0x8] sm:$0xff] %v1122_v59  }
 0x3a6 PF: > { %s14_s17 = sadd.s32 1, %s1283_s17   ;;  %s1465_s15 = smov %s1279_s16 }
 0x3a7   : > { %p11_p5 = scmp.ge.s32.totalorder %s14_s17, 4   ;;  %s1466_s16 = smov %s1468_s18 }
 0x3a9   :  { %13 = sbr.rel (!%p11_p5) target bundleno = 2 (0x2), region = 75 }

</bundles_post_ra>
